<compile_context>
chip_gen: v7x
topology: tpu7x:2x2x1
jax: 0.10.0
libtpu: 0.0.40
codegen_flags: <defaults>
</compile_context>

<pallas_src>
import jax
import jax.numpy as jnp
from jax.experimental import pallas as pl
from jax.experimental.pallas import tpu as pltpu

IN_DIM = 12
HID_DIM = 64
FC_DIM = 512


def _round_up(n, m):
    return ((n + m - 1) // m) * m


def geonet_kernel(x_ref, w1_ref, b1_ref, w2_ref, b2_ref, o_ref):
    # fc1: (TILE_B, 12) @ (12, 64) on the MXU in bf16, accumulate in f32.
    x = x_ref[...].astype(jnp.bfloat16)
    h = jnp.dot(x, w1_ref[...], preferred_element_type=jnp.float32)
    # bias add + relu in f32 on the VPU; b1 is (1, 64) and broadcasts over rows.
    h = jnp.maximum(h + b1_ref[...], 0.0)
    # fc2: (TILE_B, 64) @ (64, 512) on the MXU in bf16, accumulate in f32.
    out = jnp.dot(h.astype(jnp.bfloat16), w2_ref[...],
                  preferred_element_type=jnp.float32)
    out = out + b2_ref[...]
    o_ref[...] = out.astype(o_ref.dtype)


def geonet_forward(x, w1, b1, w2, b2, *, tile_b=2048, out_dtype=jnp.float32):
    """x: (B, 12) f32.  w1: (12, 64), b1: (1, 64), w2: (64, 512), b2: (1, 512).

    Returns (B, FC_DIM) in `out_dtype` (f32 by default to match the PyTorch
    module; pass jnp.bfloat16 to halve the dominant HBM write traffic if the
    consumer tolerates it).
    """
    B = x.shape[0]

    # Effective batch tile: sublane-aligned (multiple of 8), never larger than
    # the (rounded-up) batch so tiny inference batches still compile to a
    # single grid step.
    tile = min(_round_up(tile_b, 8), _round_up(B, 8))
    b_pad = _round_up(B, tile)
    if b_pad != B:
        x = jnp.pad(x, ((0, b_pad - B), (0, 0)))
    n_tiles = b_pad // tile

    # bf16 weights feed the MXU at full rate; biases stay f32 (added after the
    # f32 accumulation).
    w1 = w1.astype(jnp.bfloat16)
    w2 = w2.astype(jnp.bfloat16)

    out = pl.pallas_call(
        geonet_kernel,
        out_shape=jax.ShapeDtypeStruct((b_pad, FC_DIM), out_dtype),
        grid=(n_tiles,),
        in_specs=[
            # Batch-tiled activation.
            pl.BlockSpec((tile, IN_DIM), lambda i: (i, 0)),
            # Weights/biases: constant block index -> fetched once, resident.
            pl.BlockSpec((IN_DIM, HID_DIM), lambda i: (0, 0)),
            pl.BlockSpec((1, HID_DIM), lambda i: (0, 0)),
            pl.BlockSpec((HID_DIM, FC_DIM), lambda i: (0, 0)),
            pl.BlockSpec((1, FC_DIM), lambda i: (0, 0)),
        ],
        out_specs=pl.BlockSpec((tile, FC_DIM), lambda i: (i, 0)),
        compiler_params=pltpu.CompilerParams(
            dimension_semantics=("parallel",),
        ),
    )(x, w1, b1, w2, b2)

    return out[:B] if b_pad != B else out


def init_params(key):
    """Deterministic init mimicking nn.Linear default (uniform +-1/sqrt(fan_in)).

    Weights are stored as (in_features, out_features) = PyTorch weight.T,
    biases as (1, out_features) for clean lane-axis broadcasting in the kernel.
    """
    k1, k2, k3, k4 = jax.random.split(key, 4)
    bnd1 = 1.0 / (IN_DIM ** 0.5)
    bnd2 = 1.0 / (HID_DIM ** 0.5)
    w1 = jax.random.uniform(k1, (IN_DIM, HID_DIM), jnp.float32, -bnd1, bnd1)
    b1 = jax.random.uniform(k2, (1, HID_DIM), jnp.float32, -bnd1, bnd1)
    w2 = jax.random.uniform(k3, (HID_DIM, FC_DIM), jnp.float32, -bnd2, bnd2)
    b2 = jax.random.uniform(k4, (1, FC_DIM), jnp.float32, -bnd2, bnd2)
    return w1, b1, w2, b2


if __name__ == "__main__":
    key = jax.random.PRNGKey(0)
    kx, kp = jax.random.split(key)

    # Small demo shapes: B=200 with tile_b=64 exercises multi-step batch
    # tiling plus the padded tail (200 -> 256 rows, 4 grid steps).
    B = 200
    x = jax.random.normal(kx, (B, IN_DIM), jnp.float32)
    w1, b1, w2, b2 = init_params(kp)

    out = geonet_forward(x, w1, b1, w2, b2, tile_b=64)
    out = jax.block_until_ready(out)

    # Pure-JAX f32 reference; looser tolerance because MXU operands are bf16
    # (accumulation stays f32).
    ref = jnp.maximum(x @ w1 + b1, 0.0) @ w2 + b2
    assert out.shape == (B, FC_DIM)
    assert jnp.allclose(out, ref, atol=2e-2, rtol=2e-2)

    # Tiny-batch path (single grid step, tile rounded to the batch).
    out_small = jax.block_until_ready(
        geonet_forward(x[:8], w1, b1, w2, b2))
    assert out_small.shape == (8, FC_DIM)
    assert jnp.allclose(out_small, ref[:8], atol=2e-2, rtol=2e-2)

    print("KERNEL_OK")
</pallas_src>

<mosaic_0001>
module attributes {stable_mosaic.version = 11 : i64} {
  func.func @geonet_kernel(%arg0: i32, %arg1: memref<64x12xf32, #tpu.memory_space<vmem>>, %arg2: memref<12x64xbf16, #tpu.memory_space<vmem>>, %arg3: memref<1x64xf32, #tpu.memory_space<vmem>>, %arg4: memref<64x512xbf16, #tpu.memory_space<vmem>>, %arg5: memref<1x512xf32, #tpu.memory_space<vmem>>, %arg6: memref<64x512xf32, #tpu.memory_space<vmem>>) attributes {dimension_semantics = [#tpu.dimension_semantics<parallel>], iteration_bounds = array<i64: 4>, scalar_prefetch = 0 : i64, scratch_operands = 0 : i64, tpu.core_type = #tpu.core_type<tc>, window_params = [{transform_indices = @transform_0, window_bounds = array<i64: 64, 12>}, {pipeline_mode = #tpu.pipeline_mode<synchronous>, transform_indices = @transform_1, window_bounds = array<i64: 12, 64>}, {pipeline_mode = #tpu.pipeline_mode<synchronous>, transform_indices = @transform_2, window_bounds = array<i64: 1, 64>}, {pipeline_mode = #tpu.pipeline_mode<synchronous>, transform_indices = @transform_3, window_bounds = array<i64: 64, 512>}, {pipeline_mode = #tpu.pipeline_mode<synchronous>, transform_indices = @transform_4, window_bounds = array<i64: 1, 512>}, {transform_indices = @transform_5, window_bounds = array<i64: 64, 512>}]} {
    %c0 = arith.constant 0 : index
    %c0_0 = arith.constant 0 : index
    %0 = vector.load %arg1[%c0, %c0_0] : memref<64x12xf32, #tpu.memory_space<vmem>>, vector<64x12xf32>
    %1 = arith.truncf %0 : vector<64x12xf32> to vector<64x12xbf16>
    %c0_1 = arith.constant 0 : index
    %c0_2 = arith.constant 0 : index
    %2 = vector.load %arg2[%c0_1, %c0_2] : memref<12x64xbf16, #tpu.memory_space<vmem>>, vector<12x64xbf16>
    %cst = arith.constant dense<0.000000e+00> : vector<64x64xf32>
    %3 = tpu.matmul %1, %2, %cst {dimension_numbers = #tpu.dot_dimension_numbers<[1], [0], [0], [1], [0, 0, 1, 1], [], []>} : vector<64x12xbf16>, vector<12x64xbf16>, vector<64x64xf32> -> vector<64x64xf32>
    %c0_3 = arith.constant 0 : index
    %c0_4 = arith.constant 0 : index
    %4 = vector.load %arg3[%c0_3, %c0_4] : memref<1x64xf32, #tpu.memory_space<vmem>>, vector<1x64xf32>
    %5 = vector.broadcast %4 : vector<1x64xf32> to vector<64x64xf32>
    %6 = arith.addf %3, %5 : vector<64x64xf32>
    %cst_5 = arith.constant 0.000000e+00 : f32
    %7 = vector.broadcast %cst_5 : f32 to vector<64x64xf32>
    %8 = arith.maximumf %6, %7 : vector<64x64xf32>
    %9 = arith.truncf %8 : vector<64x64xf32> to vector<64x64xbf16>
    %c0_6 = arith.constant 0 : index
    %c0_7 = arith.constant 0 : index
    %10 = vector.load %arg4[%c0_6, %c0_7] : memref<64x512xbf16, #tpu.memory_space<vmem>>, vector<64x512xbf16>
    %cst_8 = arith.constant dense<0.000000e+00> : vector<64x512xf32>
    %11 = tpu.matmul %9, %10, %cst_8 {dimension_numbers = #tpu.dot_dimension_numbers<[1], [0], [0], [1], [0, 0, 1, 1], [], []>} : vector<64x64xbf16>, vector<64x512xbf16>, vector<64x512xf32> -> vector<64x512xf32>
    %c0_9 = arith.constant 0 : index
    %c0_10 = arith.constant 0 : index
    %12 = vector.load %arg5[%c0_9, %c0_10] : memref<1x512xf32, #tpu.memory_space<vmem>>, vector<1x512xf32>
    %13 = vector.broadcast %12 : vector<1x512xf32> to vector<64x512xf32>
    %14 = arith.addf %11, %13 : vector<64x512xf32>
    %c0_11 = arith.constant 0 : index
    %c0_12 = arith.constant 0 : index
    %15 = vector.load %arg6[%c0_11, %c0_12] : memref<64x512xf32, #tpu.memory_space<vmem>>, vector<64x512xf32>
    tpu.vector_store %arg6[%c0_11, %c0_12], %14 {strides = array<i32>} : memref<64x512xf32, #tpu.memory_space<vmem>>, vector<64x512xf32>,
    return
  }
  func.func @transform_0(%arg0: i32) -> (i32, i32) {
    %c0_i32 = arith.constant 0 : i32
    %c0_i32_0 = arith.constant 0 : i32
    return %arg0, %c0_i32 : i32, i32
  }
  func.func @transform_1(%arg0: i32) -> (i32, i32) {
    %c0_i32 = arith.constant 0 : i32
    %c0_i32_0 = arith.constant 0 : i32
    %c0_i32_1 = arith.constant 0 : i32
    return %c0_i32, %c0_i32_0 : i32, i32
  }
  func.func @transform_2(%arg0: i32) -> (i32, i32) {
    %c0_i32 = arith.constant 0 : i32
    %c0_i32_0 = arith.constant 0 : i32
    %c0_i32_1 = arith.constant 0 : i32
    return %c0_i32, %c0_i32_0 : i32, i32
  }
  func.func @transform_3(%arg0: i32) -> (i32, i32) {
    %c0_i32 = arith.constant 0 : i32
    %c0_i32_0 = arith.constant 0 : i32
    %c0_i32_1 = arith.constant 0 : i32
    return %c0_i32, %c0_i32_0 : i32, i32
  }
  func.func @transform_4(%arg0: i32) -> (i32, i32) {
    %c0_i32 = arith.constant 0 : i32
    %c0_i32_0 = arith.constant 0 : i32
    %c0_i32_1 = arith.constant 0 : i32
    return %c0_i32, %c0_i32_0 : i32, i32
  }
  func.func @transform_5(%arg0: i32) -> (i32, i32) {
    %c0_i32 = arith.constant 0 : i32
    %c0_i32_0 = arith.constant 0 : i32
    return %arg0, %c0_i32 : i32, i32
  }
}

</mosaic_0001>

<bundles_post_ra>
// kernel: tpu_custom_call.1
= control target key start
LH: loop header
LB: loop body
LE: loop exit
PB: predicated region body
PF: predicated region fallthrough
CT: control target
= control target key end

     0   :  { %10 = vsyncpa [#allocation3], 0  ;;  %s1209_s0 = inlined_call_operand.vmem [shape: f32[256,12], index: 0, kind: input, shape index: {}]   ;;  %s1210_s1 = inlined_call_operand.vmem [shape: bf16[12,64], index: 1, kind: input, shape index: {}]   ;;  %s1211_s2 = inlined_call_operand.vmem [shape: f32[1,64], index: 2, kind: input, shape index: {}]   ;;  %s1212_s3 = inlined_call_operand.vmem [shape: bf16[64,512], index: 3, kind: input, shape index: {}]   ;;  %s1213_s4 = inlined_call_operand.vmem [shape: f32[1,512], index: 4, kind: input, shape index: {}]   ;;  %s1214_s5 = inlined_call_operand.hbm [shape: f32[256,512], index: 5, kind: output, shape index: {}]  }
   0x1   :  { %12 = vsyncpa [#allocation3 + $0x1], 0  ;;  %s959_s18 = smov 0   ;;  %s961_s19 = smov 0  }
   0x2   :  { %s963_s20 = smov 0   ;;  %s965_s21 = smov 0  }
   0x3 LB: > { %s980_s22 = sadd.s32 4294967295, %s923_s21   ;;  %s733_s23 = sadd.s32 4294967294, %s923_s21   ;;  %s923_s21 = sphi %s965_s21, %s1220_s21   ;;  %s919_s20 = sphi %s963_s20, %s1219_s20   ;;  %s915_s19 = sphi %s961_s19, %s1218_s19   ;;  %s911_s18 = sphi %s959_s18, %s1217_s18  }
   0x4   : > { %s984_s24 = sadd.s32 1, %s923_s21   ;;  %s135_s25 = sadd.s32 1, %s919_s20 }
   0x5   : > { %s132_s26 = ssub.s32 %s923_s21, %s984_s24  ;;  %p145_p0 = scmp.ne.s32.totalorder %s919_s20, %s915_s19 }
   0x6   : > { %p133_p1 = scmp.eq.s32.totalorder %s132_s26, 0  ;;  %p146_p2 = scmp.eq.s32.totalorder %s980_s22, 3 }
   0x7   : > { %p151_p3 = scmp.ne.s32.totalorder %s915_s19, %s911_s18  ;;  %p152_p4 = scmp.eq.s32.totalorder %s733_s23, 3 }
   0x8   : > { %s995_s27 = scalar_select %p133_p1, %s919_s20, %s135_s25  }
   0x9   : > { %p997_p5 = por %p146_p2, %p145_p0  ;;  %p1001_p6 = por %p152_p4, %p151_p3 }
   0xa   : > { %p736_p7 = scmp.ge.s32.totalorder %s923_s21, 1  ;;  %p191_p8 = scmp.lt.s32.totalorder %s923_s21, 5 }
   0xc   : > { %p192_p9 = pnand %p736_p7, %p191_p8 }
   0xd   : > { %v836_v0 = vld [vmem:[%s1210_s1] sm:$0x3f] (!%p192_p9)   ;;  %vm266_vm0 = vcmask (!%p192_p9), 1045504   ;;  %s738_s7 = sshll.u32 (!%p192_p9), %s980_s22, 3  ;;  %v839_v2 = vld [vmem:[%s1212_s3 + $0xc] ss:$16 sps:$4 sm:$0xff] (!%p192_p9)   ;;  %v365_v60 = vlaneseq (!%p192_p9) }
   0xe   : > { %195 = sbr.rel (%p192_p9) target bundleno = 505 (0x1f9), region = 40  ;;  %793 = vmatprep.subr.msk.bf16.mxu0 (!%p192_p9), %vm266_vm0, %v836_v0  ;;  %v268_v1 = vsel (!%p192_p9), %vm266_vm0, %v836_v0, 0  ;;  %p220_p10 = scmp.lt.s32.totalorder (!%p192_p9), %s738_s7, 31  ;;  %v840_v3 = vld [vmem:[%s1212_s3 + $0x4] ss:$16 sps:$4 sm:$0xff] (!%p192_p9)   ;;  %vm253_vm1 = vcmask (!%p192_p9), 97280  }
   0xf   : > { %784 = vmatpush3.bf16.msra.mxu0 (!%p192_p9), %v268_v1  ;;  %v842_v4 = vld [vmem:[%s1212_s3] ss:$16 sps:$4 sm:$0xff] (!%p192_p9)   ;;  %478 = vmatprep.subr.bf16.mxu1 (!%p192_p9), %v840_v3  ;;  %v846_v5 = vld [vmem:[%s1212_s3 + $0x24] ss:$16 sps:$4 sm:$0xff] (!%p192_p9)   ;;  %v837_v7 = vld [vmem:[%s1212_s3 + $0x8] ss:$16 sps:$4 sm:$0xff] (!%p192_p9)  }
  0x10   : > { %551 = vmatprep.subr.bf16.mxu0 (!%p192_p9), %v839_v2  ;;  %479 = vmatpush1.bf16.msra.mxu1 (!%p192_p9), %v842_v4  ;;  %v848_v6 = vld [vmem:[%s1212_s3 + $0x20] ss:$16 sps:$4 sm:$0xff] (!%p192_p9)   ;;  %v845_v17 = vld [vmem:[%s1212_s3 + $0x2c] ss:$16 sps:$4 sm:$0xff] (!%p192_p9)   ;;  %v843_v20 = vld [vmem:[%s1212_s3 + $0x28] ss:$16 sps:$4 sm:$0xff] (!%p192_p9)  }
  0x11   : > { %480 = vmatprep.subr.bf16.mxu1 (!%p192_p9), %v846_v5  ;;  %v851_v22 = vld [vmem:[%s1212_s3 + $0x4c] ss:$16 sps:$4 sm:$0xff] (!%p192_p9)   ;;  %v852_v23 = vld [vmem:[%s1212_s3 + $0x44] ss:$16 sps:$4 sm:$0xff] (!%p192_p9)   ;;  %v849_v24 = vld [vmem:[%s1212_s3 + $0x48] ss:$16 sps:$4 sm:$0xff] (!%p192_p9)  }
  0x12   : > { %v854_v25 = vld [vmem:[%s1212_s3 + $0x40] ss:$16 sps:$4 sm:$0xff] (!%p192_p9)   ;;  %v857_v26 = vld [vmem:[%s1212_s3 + $0x6c] ss:$16 sps:$4 sm:$0xff] (!%p192_p9)   ;;  %v858_v27 = vld [vmem:[%s1212_s3 + $0x64] ss:$16 sps:$4 sm:$0xff] (!%p192_p9)  }
  0x13   : > { %v855_v28 = vld [vmem:[%s1212_s3 + $0x68] ss:$16 sps:$4 sm:$0xff] (!%p192_p9)   ;;  %v860_v29 = vld [vmem:[%s1212_s3 + $0x60] ss:$16 sps:$4 sm:$0xff] (!%p192_p9)   ;;  %v925_v30 = vmov (!%p192_p9), 0   ;;  %vm465_vm2 = vcmask (!%p192_p9), 523264  }
  0x14   : > { %481 = vmatpush1.bf16.msra.mxu1 (!%p192_p9), %v848_v6  ;;  %510 = vmatprep.mubr.bf16.mxu1 (!%p192_p9), %v925_v30  ;;  %v740_v31 = vld [vmem:[%s1211_s2] ss:$0 sm:$0xff] (!%p192_p9)  ;;  %v366_v61 = vshrl.u32 (!%p192_p9), %v365_v60, 7  ;;  %s777_s25 = sshll.u32 (!%p192_p9), %s980_s22, 12  ;;  %s926_s9 = smov (!%p192_p9), [#allocation2]  }
  0x15   : > { %s1222_s7 = smov (!%p220_p10, %s738_s7), 31  ;;  %482 = vmatprep.subr.bf16.mxu1 %v852_v23  ;;  %v363_v0 = vld [vmem:[%s1213_s4] sm:$0xf]  ;;  %s1154_s6 = scalar_lea.hbm %s1214_s5, %s777_s25 }
  0x16   : > { %s739_s14 = sshll.u32 %s1222_s7, 3  ;;  %v367_v62 = vsub.s32 0, %v366_v61  ;;  %v375_v63 = vsub.s32 2, %v366_v61  ;;  %v371_v1 = vsub.s32 1, %v366_v61  ;;  %v379_v2 = vsub.s32 3, %v366_v61  ;;  %s865_s10 = sshll.u32 %s926_s9, 4  ;;  %s866_s10 = int_to_ptr.vmem [resolvable:$false] %s865_s10 }
  0x17   : > { %s223_s30 = scalar_lea.vmem %s1209_s0, %s739_s14  ;;  %s216_s14 = sand.u32 1, %s915_s19  }
  0x18   : > { %v227_v8 = vld [vmem:[%s223_s30] sm:$0xff]  ;;  %v228_v9 = vld [vmem:[%s223_s30 + $0x8] sm:$0xff]  ;;  %v229_v10 = vld [vmem:[%s223_s30 + $0x10] sm:$0xff]  ;;  %483 = vmatpush1.bf16.msra.mxu1 %v854_v25  ;;  %s737_s17 = sshll.u32 %s216_s14, 8  ;;  %v1083_v3 = vrot.slane %v363_v0, %v367_v62  ;;  %v1085_v4 = vrot.slane %v363_v0, %v375_v63  ;;  %v1087_v5 = vrot.slane %v363_v0, %v371_v1  ;;  %v1089_v6 = vrot.slane %v363_v0, %v379_v2  ;;  %s1168_s8 = scalar_lea.sflag [#allocation3], %s216_s14 }
  0x19   : > { %v235_v11 = vpack.c.bf16 %v228_v9, %v227_v8  ;;  %v230_v12 = vld [vmem:[%s223_s30 + $0x18] sm:$0xff]  ;;  %v231_v13 = vld [vmem:[%s223_s30 + $0x20] sm:$0xff]  ;;  %v232_v14 = vld [vmem:[%s223_s30 + $0x28] sm:$0xff]  ;;  %484 = vmatprep.subr.bf16.mxu1 %v858_v27  ;;  %s1095_s23 = scalar_lea.vmem [#allocation2], %s737_s17  ;;  %s867_s11 = scalar_lea.vmem %s866_s10, 8192 }
  0x1a   : > { %v236_v15 = vpack.c.bf16 %v230_v12, %v229_v10  ;;  %v237_v16 = vpack.c.bf16 %v232_v14, %v231_v13  ;;  %v233_v18 = vld [vmem:[%s223_s30 + $0x30] sm:$0xff]  ;;  %v234_v19 = vld [vmem:[%s223_s30 + $0x38] sm:$0xff]  ;;  %s671_s26 = sshll.u32 %s1095_s23, 4  ;;  %s1156_s26 = int_to_ptr.vmem [resolvable:$true] %s671_s26 }
  0x1b   : > { %785 = vmatprep.mubr.msk.bf16.mxu0 %vm253_vm1, %v235_v11  ;;  %v238_v21 = vpack.c.bf16 %v234_v19, %v233_v18  ;;  %s861_s7 = scalar_lea.vmem %s1156_s26, 4096  ;;  %p868_p0 = scmp.lt.s32.totalorder %s1156_s26, %s866_s10 }
  0x1c   : > { %786 = vmatmul.mubr.msk.bf16.vlgmr.msra.gmra.mrb[0].mxu0 %vm253_vm1, %v236_v15  ;;  %485 = vmatpush1.bf16.msra.mxu1 %v860_v29  ;;  %p862_p11 = scmp.ne.s32.totalorder %s1156_s26, %s861_s7  ;;  %p869_p1 = scmp.lt.s32.totalorder %s867_s11, %s861_s7 }
  0x1d   : > { %789 = vmatprep.mubr.msk.bf16.mxu0 %vm253_vm1, %v237_v16  ;;  %552 = vmatpush1.bf16.msra.mxu0 %v837_v7 }
  0x1e   : > { %553 = vmatprep.subr.bf16.mxu0 %v845_v17  ;;  %p863_p12 = pnand %p862_p11, %p997_p5  ;;  %p870_p2 = por %p869_p1, %p868_p0 }
  0x20   : > { %p864_p13 = pneg %p863_p12 }
  0x21   : > { %554 = vmatpush1.bf16.msra.mxu0 %v843_v20 }
  0x22   : > { %555 = vmatprep.subr.bf16.mxu0 %v851_v22  ;;  %p871_p3 = pnand %p870_p2, %p864_p13 }
  0x24   : > { %790 = vmatmul.mubr.msk.bf16.gmra.mrb[4].mxu0 %vm253_vm1, %v238_v21 }
  0x25   : > { %556 = vmatpush1.bf16.msra.mxu0 %v849_v24  ;;  %583 = vmatprep.mubr.bf16.mxu0 %v925_v30 }
  0x26   : > { %557 = vmatprep.subr.bf16.mxu0 %v857_v26 }
  0x29   : > { %558 = vmatpush1.bf16.msra.mxu0 %v855_v28 }
  0xef   : > { %v787_v32 = vpop.f32.mrb[0].mxu0 }
  0xf0   : > { %v313_v33 = vadd.f32 %v787_v32, %v740_v31  ;;  %v304_v34 = vpop.f32.mrb[1].mxu0 }
  0xf1   : > { %v305_v35 = vadd.f32 %v740_v31, %v304_v34  ;;  %v788_v36 = vpop.f32.mrb[2].mxu0 }
  0xf2   : > { %v316_v37 = vadd.f32 %v788_v36, %v740_v31  ;;  %v307_v38 = vpop.f32.mrb[3].mxu0  ;;  %v337_v40 = vmax.f32 %v313_v33, 0.0 }
  0xf3   : > { %v308_v39 = vadd.f32 %v740_v31, %v307_v38  ;;  %v335_v42 = vmax.f32 %v305_v35, 0.0 }
  0xf4   : > { %v338_v41 = vmax.f32 %v316_v37, 0.0 }
  0xf5   : > { %v336_v43 = vmax.f32 %v308_v39, 0.0 }
  0xf6   : > { %v344_v44 = vpack.c.bf16 %v338_v41, %v337_v40 }
  0xf7   : > { %v343_v45 = vpack.c.bf16 %v336_v43, %v335_v42  ;;  %v791_v46 = vpop.f32.mrb[4].mxu0 }
  0xf8   : > { %v329_v47 = vadd.f32 %v791_v46, %v740_v31  ;;  %v320_v48 = vpop.f32.mrb[5].mxu0 }
  0xf9   : > { %762 = vmatmul.mubr.msk.bf16.vlgmr.msra.gmra.mrb[0].mxu1 %vm465_vm2, %v343_v45  ;;  %766 = vmatmul.mubr.msk.bf16.vlgmr.msra.gmra.mrb[8].mxu0 %vm465_vm2, %v343_v45  ;;  %v321_v49 = vadd.f32 %v740_v31, %v320_v48  ;;  %v792_v50 = vpop.f32.mrb[6].mxu0 }
  0xfa   : > { %v341_v51 = vmax.f32 %v329_v47, 0.0  ;;  %v332_v52 = vadd.f32 %v792_v50, %v740_v31  ;;  %v323_v53 = vpop.f32.mrb[7].mxu0  ;;  %520 = vmatprep.mubr.bf16.mxu1 %v925_v30  ;;  %593 = vmatprep.mubr.bf16.mxu0 %v925_v30 }
  0xfb   : > { %v339_v54 = vmax.f32 %v321_v49, 0.0  ;;  %v324_v55 = vadd.f32 %v740_v31, %v323_v53 }
  0xfc   : > { %v342_v56 = vmax.f32 %v332_v52, 0.0 }
  0xfd   : > { %v340_v57 = vmax.f32 %v324_v55, 0.0 }
  0xfe   : > { %v346_v58 = vpack.c.bf16 %v342_v56, %v341_v51 }
  0xff   : > { %v345_v59 = vpack.c.bf16 %v340_v57, %v339_v54 }
 0x101   : > { %763 = vmatmul.mubr.msk.bf16.gmra.mrb[4].mxu1 %vm465_vm2, %v344_v44  ;;  %767 = vmatmul.mubr.msk.bf16.gmra.mrb[12].mxu0 %vm465_vm2, %v344_v44 }
 0x102   : > { %530 = vmatprep.mubr.bf16.mxu1 %v925_v30  ;;  %603 = vmatprep.mubr.bf16.mxu0 %v925_v30 }
 0x109   : > { %764 = vmatmul.mubr.msk.bf16.gmra.mrb[8].mxu1 %vm465_vm2, %v345_v59  ;;  %768 = vmatmul.mubr.msk.bf16.gmra.mrb[16].mxu0 %vm465_vm2, %v345_v59 }
 0x10a   : > { %540 = vmatprep.mubr.bf16.mxu1 %v925_v30  ;;  %613 = vmatprep.mubr.bf16.mxu0 %v925_v30 }
 0x111   : > { %765 = vmatmul.mubr.msk.bf16.gmra.mrb[12].mxu1 %vm465_vm2, %v346_v58  ;;  %769 = vmatmul.mubr.msk.bf16.gmra.mrb[20].mxu0 %vm465_vm2, %v346_v58 }
 0x1cc   : > { %v512_v7 = vpop.f32.mrb[0].mxu1  ;;  %v585_v8 = vpop.f32.mrb[8].mxu0 }
 0x1cd   : > { %v513_v9 = vadd.f32 %v512_v7, %v1083_v3  ;;  %v586_v10 = vadd.f32 %v585_v8, %v1085_v4  ;;  %v514_v11 = vpop.f32.mrb[1].mxu1  ;;  %v587_v12 = vpop.f32.mrb[9].mxu0 }
 0x1ce   : > { %v515_v13 = vadd.f32 %v514_v11, %v1087_v5  ;;  %v588_v14 = vadd.f32 %v587_v12, %v1089_v6  ;;  %v516_v15 = vpop.f32.mrb[2].mxu1  ;;  %v589_v16 = vpop.f32.mrb[10].mxu0 }
 0x1cf   : > { %624 = vst [vmem:[%s1095_s23] sm:$0xff] %v513_v9  ;;  %626 = vst [vmem:[%s1095_s23 + $0x10] sm:$0xff] %v586_v10  ;;  %v517_v17 = vadd.f32 %v516_v15, %v1083_v3  ;;  %v590_v18 = vadd.f32 %v589_v16, %v1085_v4  ;;  %v518_v19 = vpop.f32.mrb[3].mxu1  ;;  %v591_v20 = vpop.f32.mrb[11].mxu0 }
 0x1d0   : > { %625 = vst [vmem:[%s1095_s23 + $0x8] sm:$0xff] %v515_v13  ;;  %627 = vst [vmem:[%s1095_s23 + $0x18] sm:$0xff] %v588_v14  ;;  %v519_v21 = vadd.f32 %v518_v19, %v1087_v5  ;;  %v592_v22 = vadd.f32 %v591_v20, %v1089_v6 }
 0x1d1   : > { %628 = vst [vmem:[%s1095_s23 + $0x20] sm:$0xff] %v517_v17  ;;  %630 = vst [vmem:[%s1095_s23 + $0x30] sm:$0xff] %v590_v18 }
 0x1d2   : > { %629 = vst [vmem:[%s1095_s23 + $0x28] sm:$0xff] %v519_v21  ;;  %631 = vst [vmem:[%s1095_s23 + $0x38] sm:$0xff] %v592_v22 }
 0x1d4   : > { %v522_v23 = vpop.f32.mrb[4].mxu1  ;;  %v595_v24 = vpop.f32.mrb[12].mxu0 }
 0x1d5   : > { %v523_v25 = vadd.f32 %v522_v23, %v1083_v3  ;;  %v596_v26 = vadd.f32 %v595_v24, %v1085_v4  ;;  %v524_v27 = vpop.f32.mrb[5].mxu1  ;;  %v597_v28 = vpop.f32.mrb[13].mxu0 }
 0x1d6   : > { %v525_v29 = vadd.f32 %v524_v27, %v1087_v5  ;;  %v598_v30 = vadd.f32 %v597_v28, %v1089_v6  ;;  %v526_v31 = vpop.f32.mrb[6].mxu1  ;;  %v599_v32 = vpop.f32.mrb[14].mxu0 }
 0x1d7   : > { %632 = vst [vmem:[%s1095_s23 + $0x40] sm:$0xff] %v523_v25  ;;  %634 = vst [vmem:[%s1095_s23 + $0x50] sm:$0xff] %v596_v26  ;;  %v527_v33 = vadd.f32 %v526_v31, %v1083_v3  ;;  %v600_v34 = vadd.f32 %v599_v32, %v1085_v4  ;;  %v528_v35 = vpop.f32.mrb[7].mxu1  ;;  %v601_v36 = vpop.f32.mrb[15].mxu0 }
 0x1d8   : > { %633 = vst [vmem:[%s1095_s23 + $0x48] sm:$0xff] %v525_v29  ;;  %635 = vst [vmem:[%s1095_s23 + $0x58] sm:$0xff] %v598_v30  ;;  %v529_v37 = vadd.f32 %v528_v35, %v1087_v5  ;;  %v602_v38 = vadd.f32 %v601_v36, %v1089_v6 }
 0x1d9   : > { %636 = vst [vmem:[%s1095_s23 + $0x60] sm:$0xff] %v527_v33  ;;  %638 = vst [vmem:[%s1095_s23 + $0x70] sm:$0xff] %v600_v34 }
 0x1da   : > { %637 = vst [vmem:[%s1095_s23 + $0x68] sm:$0xff] %v529_v37  ;;  %639 = vst [vmem:[%s1095_s23 + $0x78] sm:$0xff] %v602_v38 }
 0x1dc   : > { %v532_v39 = vpop.f32.mrb[8].mxu1  ;;  %v605_v40 = vpop.f32.mrb[16].mxu0 }
 0x1dd   : > { %v533_v41 = vadd.f32 %v532_v39, %v1083_v3  ;;  %v606_v42 = vadd.f32 %v605_v40, %v1085_v4  ;;  %v534_v43 = vpop.f32.mrb[9].mxu1  ;;  %v607_v44 = vpop.f32.mrb[17].mxu0 }
 0x1de   : > { %v535_v45 = vadd.f32 %v534_v43, %v1087_v5  ;;  %v608_v46 = vadd.f32 %v607_v44, %v1089_v6  ;;  %v536_v47 = vpop.f32.mrb[10].mxu1  ;;  %v609_v48 = vpop.f32.mrb[18].mxu0 }
 0x1df   : > { %640 = vst [vmem:[%s1095_s23 + $0x80] sm:$0xff] %v533_v41  ;;  %642 = vst [vmem:[%s1095_s23 + $0x90] sm:$0xff] %v606_v42  ;;  %v537_v49 = vadd.f32 %v536_v47, %v1083_v3  ;;  %v610_v50 = vadd.f32 %v609_v48, %v1085_v4  ;;  %v538_v51 = vpop.f32.mrb[11].mxu1  ;;  %v611_v52 = vpop.f32.mrb[19].mxu0 }
 0x1e0   : > { %641 = vst [vmem:[%s1095_s23 + $0x88] sm:$0xff] %v535_v45  ;;  %643 = vst [vmem:[%s1095_s23 + $0x98] sm:$0xff] %v608_v46  ;;  %v539_v53 = vadd.f32 %v538_v51, %v1087_v5  ;;  %v612_v54 = vadd.f32 %v611_v52, %v1089_v6 }
 0x1e1   : > { %644 = vst [vmem:[%s1095_s23 + $0xa0] sm:$0xff] %v537_v49  ;;  %646 = vst [vmem:[%s1095_s23 + $0xb0] sm:$0xff] %v610_v50 }
 0x1e2   : > { %645 = vst [vmem:[%s1095_s23 + $0xa8] sm:$0xff] %v539_v53  ;;  %647 = vst [vmem:[%s1095_s23 + $0xb8] sm:$0xff] %v612_v54 }
 0x1e4   : > { %v542_v55 = vpop.f32.mrb[12].mxu1  ;;  %v615_v56 = vpop.f32.mrb[20].mxu0 }
 0x1e5   : > { %v543_v57 = vadd.f32 %v542_v55, %v1083_v3  ;;  %v616_v58 = vadd.f32 %v615_v56, %v1085_v4  ;;  %v544_v59 = vpop.f32.mrb[13].mxu1  ;;  %v617_v60 = vpop.f32.mrb[21].mxu0 }
 0x1e6   : > { %v545_v61 = vadd.f32 %v544_v59, %v1087_v5  ;;  %v618_v62 = vadd.f32 %v617_v60, %v1089_v6  ;;  %v546_v63 = vpop.f32.mrb[14].mxu1  ;;  %v619_v0 = vpop.f32.mrb[22].mxu0 }
 0x1e7   : > { %648 = vst [vmem:[%s1095_s23 + $0xc0] sm:$0xff] %v543_v57  ;;  %650 = vst [vmem:[%s1095_s23 + $0xd0] sm:$0xff] %v616_v58  ;;  %v547_v1 = vadd.f32 %v546_v63, %v1083_v3  ;;  %v620_v2 = vadd.f32 %v619_v0, %v1085_v4  ;;  %v548_v7 = vpop.f32.mrb[15].mxu1  ;;  %v621_v8 = vpop.f32.mrb[23].mxu0 }
 0x1e8   : > { %649 = vst [vmem:[%s1095_s23 + $0xc8] sm:$0xff] %v545_v61  ;;  %651 = vst [vmem:[%s1095_s23 + $0xd8] sm:$0xff] %v618_v62  ;;  %v549_v9 = vadd.f32 %v548_v7, %v1087_v5  ;;  %v622_v3 = vadd.f32 %v621_v8, %v1089_v6 }
 0x1e9   : > { %652 = vst [vmem:[%s1095_s23 + $0xe0] sm:$0xff] %v547_v1  ;;  %654 = vst [vmem:[%s1095_s23 + $0xf0] sm:$0xff] %v620_v2 }
 0x1ea   : > { %653 = vst [vmem:[%s1095_s23 + $0xe8] sm:$0xff] %v549_v9  ;;  %655 = vst [vmem:[%s1095_s23 + $0xf8] sm:$0xff] %v622_v3 }
 0x1eb   : > { %874 = shalt.err (!%p871_p3)
}
 0x1ec   : > { %s875_s12 = scalar_lea.hbm %s1154_s6, 4096  ;;  %s879_s15 = scalar_lea.hbm %s1214_s5, 16384 }
 0x1ed   : > { %p876_p4 = scmp.ne.s32.totalorder %s1154_s6, %s875_s12  ;;  %p880_p9 = scmp.lt.u32.totalorder %s1154_s6, %s1214_s5 }
 0x1ee   : > { %p881_p10 = scmp.lt.u32.totalorder %s879_s15, %s875_s12  ;;  %p883_p12 = scmp.lt.u32.totalorder %s875_s12, %s1154_s6 }
 0x1ef   : > { %p877_p7 = pnand %p876_p4, %p997_p5 }
 0x1f0   : > { %p882_p11 = por %p881_p10, %p880_p9 }
 0x1f1   : > { %p878_p8 = pneg %p877_p7 }
 0x1f2   : > { %p884_p13 = por %p883_p12, %p882_p11 }
 0x1f4   : > { %p885_p0 = pnand %p884_p13, %p878_p8 }
 0x1f6   : > { %888 = shalt.err (!%p885_p0)
}
 0x1f7   : > { %s927_s23 = smov 512   ;;  %s928_s25 = smov 32  }
 0x1f8   : > { %794 = dma.vmem_to_hbm [thread:$0]  (%p997_p5), %s1156_s26, 4096, %s1154_s6, %s1168_s8, %s927_s23, %s927_s23, %s928_s25  }
 0x1f9 PF: > { %p800_p1 = scmp.ge.s32.totalorder %s923_s21, 2  ;;  %s686_s22 = sand.u32 1, %s911_s18  }
 0x1fa   : > { %s687_s30 = scalar_lea.sflag [#allocation3], %s686_s22 }
 0x1fb   : > { %p797_p2 = pnand %p800_p1, %p1001_p6 }
 0x1fd   : > { %906 = dma.done.wait (!%p797_p2), %s687_s30, 4096  }
 0x1fe   : > { %908 = vsyncadd (!%p797_p2), %s687_s30, 4294963200  ;;  %p15_p3 = scmp.ge.s32.totalorder %s984_s24, 6   ;;  %s1217_s18 = smov %s915_s19 }
 0x1ff   : > { %s1218_s19 = smov %s919_s20  ;;  %s1219_s20 = smov %s995_s27 }
 0x200   : > { %s1220_s21 = smov %s984_s24  ;;  %17 = sbr.rel (!%p15_p3) target bundleno = 3 (0x3), region = 75 }
 0x207   :  { %692 = vsyncpa [#allocation3], 1 }
 0x208   :  { %694 = vsyncpa [#allocation3 + $0x1], 1 }

</bundles_post_ra>
